<compile_context>
chip_gen: v5e
topology: v5e:2x2
jax: 0.10.0
libtpu: 0.0.40
codegen_flags: <defaults>
</compile_context>

<pallas_src>
import functools

import jax
import jax.numpy as jnp
from jax.experimental import pallas as pl
from jax.experimental.pallas import tpu as pltpu


def _round_up(x, m):
    return (x + m - 1) // m * m


def _tpu_generation():
    try:
        kind = jax.devices()[0].device_kind.lower()
    except Exception:
        return None
    if "v5" in kind:
        return "v5"
    if "v6" in kind:
        return "v6"
    if "v7" in kind:
        return "v7"
    return None


# Per-generation tiling configuration.
#   tile_budget: VMEM bytes allowed for the logits tile path
#                (double-buffered input + one f32 working copy).
#   vmem_cap:    upper bound for vmem_limit_bytes (None -> leave compiler default).
_GEN_CFG = {
    "v5": dict(row_block=512, vocab_tile=4096, tile_budget=40 << 20, vmem_cap=96 << 20),
    "v6": dict(row_block=512, vocab_tile=4096, tile_budget=40 << 20, vmem_cap=96 << 20),
    "v7": dict(row_block=256, vocab_tile=4096, tile_budget=20 << 20, vmem_cap=48 << 20),
}
_DEFAULT_CFG = dict(row_block=256, vocab_tile=2048, tile_budget=10 << 20, vmem_cap=None)


def _ce_single_tile_kernel(logits_ref, target_ref, loss_ref, *, vocab_size, native_cmp):
    """Whole vocab shard in one tile: plain (non-online) softmax cross entropy."""
    raw = logits_ref[...]                                   # (rb, V), native dtype
    if not native_cmp:
        raw = raw.astype(jnp.float32)
    tgt = target_ref[...]                                   # (rb, 1) int32

    # world_size == 1 / rank == 0  ->  start_index = 0, end_index = vocab_size
    target_mask = (tgt < 0) | (tgt >= vocab_size)
    masked_target = jnp.where(target_mask, 0, tgt)

    # One-hot row gather of the predicted (raw) logit.
    col = jax.lax.broadcasted_iota(jnp.int32, raw.shape, 1)
    hit = col == masked_target
    predicted = jnp.sum(jnp.where(hit, raw, jnp.asarray(0, raw.dtype)),
                        axis=-1, keepdims=True).astype(jnp.float32)

    m = jnp.max(raw, axis=-1, keepdims=True).astype(jnp.float32)
    l = jnp.sum(jnp.exp(raw.astype(jnp.float32) - m), axis=-1, keepdims=True)

    # Reference: predicted logits are taken from (logits - max) and zeroed where masked.
    predicted_shifted = jnp.where(target_mask, 0.0, predicted - m)
    loss_ref[...] = jnp.log(l) - predicted_shifted


def _ce_online_kernel(logits_ref, target_ref, loss_ref, m_ref, l_ref, p_ref, *,
                      vocab_size, vocab_tile, vocab_ragged, native_cmp):
    """Online-logsumexp over vocab tiles (reduction axis is the last grid axis)."""
    k = pl.program_id(1)
    nk = pl.num_programs(1)

    @pl.when(k == 0)
    def _init():
        m_ref[...] = jnp.full_like(m_ref, -jnp.inf)
        l_ref[...] = jnp.zeros_like(l_ref)
        p_ref[...] = jnp.zeros_like(p_ref)

    raw = logits_ref[...]                                   # (rb, tv), native dtype
    if not native_cmp:
        raw = raw.astype(jnp.float32)
    tgt = target_ref[...]                                   # (rb, 1) int32

    target_mask = (tgt < 0) | (tgt >= vocab_size)
    masked_target = jnp.where(target_mask, 0, tgt)

    col = jax.lax.broadcasted_iota(jnp.int32, raw.shape, 1)  # local column index
    if vocab_ragged:
        # Partial last tile: the out-of-bounds part of the Pallas block read holds
        # unspecified values -- force columns with global index >= vocab_size to -inf
        # so they never affect max / sum-exp (there is always >= 1 valid column per
        # tile, so the running max stays finite).
        limit = vocab_size - k * vocab_tile
        raw = jnp.where(col < limit, raw, jnp.asarray(-jnp.inf, raw.dtype))

    # Gather the predicted raw logit for this tile.  The tile offset is folded into the
    # (rb,1) target (cheap) instead of the (rb,tv) iota (per-element add).
    local_tgt = masked_target - k * vocab_tile
    hit = col == local_tgt                                   # never matches padded cols
    p_ref[...] += jnp.sum(jnp.where(hit, raw, jnp.asarray(0, raw.dtype)),
                          axis=-1, keepdims=True).astype(jnp.float32)

    tile_max = jnp.max(raw, axis=-1, keepdims=True).astype(jnp.float32)
    m_prev = m_ref[...]
    m_new = jnp.maximum(m_prev, tile_max)
    # Guard the rescale factor so an all -inf first tile cannot produce NaN.
    alpha = jnp.where(m_prev == -jnp.inf, 0.0, jnp.exp(m_prev - m_new))
    l_ref[...] = alpha * l_ref[...] + jnp.sum(
        jnp.exp(raw.astype(jnp.float32) - m_new), axis=-1, keepdims=True)
    m_ref[...] = m_new

    @pl.when(k == nk - 1)
    def _finalize():
        # loss = log(sum exp(l - m)) - (l_t - m), with the masked-target contribution
        # zeroed (matches the torch reference at world_size == 1).
        predicted_shifted = jnp.where(target_mask, 0.0, p_ref[...] - m_ref[...])
        loss_ref[...] = jnp.log(l_ref[...]) - predicted_shifted


def vocab_parallel_cross_entropy_loss(sharded_logits, target, reduction="mean",
                                      row_block=None, vocab_tile=None):
    """Matches VocabParallelCrossEntropyLoss.forward for a tp_group of world_size 1.

    sharded_logits: [..., V] float (f32 or bf16), target: [...] int, same leading dims.
    """
    V = sharded_logits.shape[-1]
    lead_shape = sharded_logits.shape[:-1]

    logits_2d = sharded_logits.reshape(-1, V)
    target_2d = target.reshape(-1, 1).astype(jnp.int32)
    N = logits_2d.shape[0]

    gen = _tpu_generation()
    cfg = _GEN_CFG.get(gen, _DEFAULT_CFG)
    dtype = logits_2d.dtype
    itemsize = jnp.dtype(dtype).itemsize
    sub = 16 if dtype == jnp.bfloat16 else 8               # sublane packing granule
    bytes_per_elem = 2 * itemsize + 4                      # dbl-buffered input + f32 copy

    # ---- row block ----
    rb = row_block if row_block is not None else cfg["row_block"]
    rb = max(sub, _round_up(min(rb, _round_up(N, sub)), sub))
    # v7x has 2 TensorCores: make sure the "parallel" row axis has extent >= 2.
    if gen == "v7" and pl.cdiv(N, rb) < 2 and N > sub:
        rb = _round_up(pl.cdiv(N, 2), sub)

    # ---- vocab tile ----
    if vocab_tile is not None:
        tv = V if V <= vocab_tile else max(128, (vocab_tile // 128) * 128)
    else:
        # Prefer a single vocab tile (drops the online-softmax bookkeeping and one grid
        # dimension) when an (rb, V) tile fits the budget, shrinking rb if needed.
        rb_try = rb
        while rb_try > 64 and rb_try * V * bytes_per_elem > cfg["tile_budget"]:
            rb_try = max(sub, _round_up(rb_try // 2, sub))
        if rb_try * V * bytes_per_elem <= cfg["tile_budget"]:
            rb = rb_try
            tv = V
        else:
            tv = max(128, min(cfg["vocab_tile"],
                              (cfg["tile_budget"] // (rb * bytes_per_elem)) // 128 * 128))

    n_row_blocks = pl.cdiv(N, rb)
    nk = pl.cdiv(V, tv)
    vocab_ragged = (V % tv) != 0

    # bf16 max / compare / select natively only where the VPU has packed bf16 support.
    native_cmp = (dtype == jnp.bfloat16) and gen in ("v6", "v7")

    # ---- compiler params ----
    vmem_need = rb * tv * bytes_per_elem + (2 << 20)
    cp_kwargs = {}
    if cfg["vmem_cap"] is not None:
        cp_kwargs["vmem_limit_bytes"] = int(min(cfg["vmem_cap"],
                                                max(32 << 20, vmem_need)))

    if nk == 1:
        kernel = functools.partial(_ce_single_tile_kernel,
                                   vocab_size=V, native_cmp=native_cmp)
        loss_2d = pl.pallas_call(
            kernel,
            out_shape=jax.ShapeDtypeStruct((N, 1), jnp.float32),
            grid_spec=pltpu.PrefetchScalarGridSpec(
                num_scalar_prefetch=0,
                grid=(n_row_blocks,),
                in_specs=[
                    pl.BlockSpec((rb, tv), lambda i: (i, 0)),
                    pl.BlockSpec((rb, 1), lambda i: (i, 0)),
                ],
                out_specs=pl.BlockSpec((rb, 1), lambda i: (i, 0)),
            ),
            compiler_params=pltpu.CompilerParams(
                dimension_semantics=("parallel",), **cp_kwargs),
        )(logits_2d, target_2d)
    else:
        kernel = functools.partial(_ce_online_kernel, vocab_size=V, vocab_tile=tv,
                                   vocab_ragged=vocab_ragged, native_cmp=native_cmp)
        loss_2d = pl.pallas_call(
            kernel,
            out_shape=jax.ShapeDtypeStruct((N, 1), jnp.float32),
            grid_spec=pltpu.PrefetchScalarGridSpec(
                num_scalar_prefetch=0,
                grid=(n_row_blocks, nk),
                in_specs=[
                    # Logits: (rb, tv) tile, advances along both grid axes.
                    pl.BlockSpec((rb, tv), lambda i, k: (i, k)),
                    # Targets: constant over the vocab axis -> one DMA per row block.
                    pl.BlockSpec((rb, 1), lambda i, k: (i, 0)),
                ],
                out_specs=pl.BlockSpec((rb, 1), lambda i, k: (i, 0)),
                scratch_shapes=[pltpu.VMEM((rb, 1), jnp.float32)] * 3,  # m, l, predicted
            ),
            compiler_params=pltpu.CompilerParams(
                dimension_semantics=("parallel", "arbitrary"), **cp_kwargs),
        )(logits_2d, target_2d)

    loss = loss_2d.reshape(lead_shape)                     # per-token loss, f32
    if reduction == "mean":
        return jnp.mean(loss)
    elif reduction == "sum":
        return jnp.sum(loss)
    return loss


def _reference_loss(logits, target):
    """Pure-JAX mirror of the torch _ShardedCrossEntropy forward for world_size == 1."""
    logits = logits.astype(jnp.float32)
    V = logits.shape[-1]
    m = jnp.max(logits, axis=-1)
    shifted = logits - m[..., None]
    valid = (target >= 0) & (target < V)
    t = jnp.where(valid, target, 0)
    picked = jnp.take_along_axis(shifted, t[..., None], axis=-1)[..., 0]
    picked = jnp.where(valid, picked, 0.0)
    sum_exp = jnp.sum(jnp.exp(shifted), axis=-1)
    return jnp.log(sum_exp) - picked


if __name__ == "__main__":
    key = jax.random.PRNGKey(0)
    k1, k2, k3, k4, k5, k6 = jax.random.split(key, 6)

    # Test 1: small shapes consistent with the module (batch=2, seq=8, vocab shard=32).
    # Exercises the single-vocab-tile fast path.
    batch, seq, vocab = 2, 8, 32
    logits1 = jax.random.normal(k1, (batch, seq, vocab), dtype=jnp.float32)
    target1 = jax.random.randint(k2, (batch, seq), 0, vocab, dtype=jnp.int32)
    loss1 = jax.block_until_ready(
        vocab_parallel_cross_entropy_loss(logits1, target1, reduction="mean"))
    ref1 = jnp.mean(_reference_loss(logits1, target1))
    assert jnp.allclose(loss1, ref1, atol=1e-5, rtol=1e-5), (loss1, ref1)

    # Test 2: vocab tiling (3 aligned tiles of 128), ragged row tail (N=26), the
    # online-softmax accumulation, and the out-of-range-target mask path.
    batch2, seq2, vocab2 = 2, 13, 384
    logits2 = jax.random.normal(k3, (batch2, seq2, vocab2), dtype=jnp.float32) * 3.0
    target2 = jax.random.randint(k4, (batch2, seq2), 0, vocab2, dtype=jnp.int32)
    target2 = target2.at[0, 0].set(-100)   # out-of-range target, masked as in reference
    loss2 = jax.block_until_ready(
        vocab_parallel_cross_entropy_loss(logits2, target2, reduction="none",
                                          vocab_tile=128))
    ref2 = _reference_loss(logits2, target2)
    assert jnp.allclose(loss2, ref2, atol=1e-4, rtol=1e-4), (loss2, ref2)

    # Test 3: ragged vocab tail handled in-kernel (V=200, tiles of 128 -> last tile
    # 72 valid columns), ragged rows (N=14), bf16 input, out-of-range target.
    batch3, seq3, vocab3 = 2, 7, 200
    logits3 = (jax.random.normal(k5, (batch3, seq3, vocab3), dtype=jnp.float32)
               * 2.0).astype(jnp.bfloat16)
    target3 = jax.random.randint(k6, (batch3, seq3), 0, vocab3, dtype=jnp.int32)
    target3 = target3.at[1, 3].set(vocab3 + 7)   # out of range
    loss3 = jax.block_until_ready(
        vocab_parallel_cross_entropy_loss(logits3, target3, reduction="none",
                                          vocab_tile=128))
    ref3 = _reference_loss(logits3, target3)
    assert jnp.allclose(loss3, ref3, atol=2e-3, rtol=2e-3), (loss3, ref3)

    print("KERNEL_OK")
</pallas_src>

<mosaic_0001>
module attributes {stable_mosaic.version = 11 : i64} {
  func.func @_ce_single_tile_kernel(%arg0: i32, %arg1: memref<16x32xf32, #tpu.memory_space<vmem>>, %arg2: memref<16x1xi32, #tpu.memory_space<vmem>>, %arg3: memref<16x1xf32, #tpu.memory_space<vmem>>) attributes {dimension_semantics = [#tpu.dimension_semantics<parallel>], iteration_bounds = array<i64: 1>, scalar_prefetch = 0 : i64, scratch_operands = 0 : i64, tpu.core_type = #tpu.core_type<tc>, window_params = [{transform_indices = @transform_0, window_bounds = array<i64: 16, 32>}, {transform_indices = @transform_1, window_bounds = array<i64: 16, 1>}, {transform_indices = @transform_2, window_bounds = array<i64: 16, 1>}]} {
    %c0 = arith.constant 0 : index
    %c0_0 = arith.constant 0 : index
    %0 = vector.load %arg1[%c0, %c0_0] : memref<16x32xf32, #tpu.memory_space<vmem>>, vector<16x32xf32>
    %c0_1 = arith.constant 0 : index
    %c0_2 = arith.constant 0 : index
    %1 = vector.load %arg2[%c0_1, %c0_2] : memref<16x1xi32, #tpu.memory_space<vmem>>, vector<16x1xi32>
    %c0_i32 = arith.constant 0 : i32
    %2 = vector.broadcast %c0_i32 : i32 to vector<16x1xi32>
    %3 = arith.cmpi slt, %1, %2 : vector<16x1xi32>
    %c32_i32 = arith.constant 32 : i32
    %4 = vector.broadcast %c32_i32 : i32 to vector<16x1xi32>
    %5 = arith.cmpi sge, %1, %4 : vector<16x1xi32>
    %6 = arith.ori %3, %5 : vector<16x1xi1>
    %c0_i32_3 = arith.constant 0 : i32
    %7 = vector.broadcast %c0_i32_3 : i32 to vector<16x1xi32>
    %8 = arith.select %6, %7, %1 : vector<16x1xi1>, vector<16x1xi32>
    %9 = tpu.iota {dimensions = array<i32: 1>} : vector<16x32xi32>
    %10 = vector.broadcast %8 : vector<16x1xi32> to vector<16x32xi32>
    %11 = arith.cmpi eq, %9, %10 : vector<16x32xi32>
    %cst = arith.constant 0.000000e+00 : f32
    %12 = vector.broadcast %cst : f32 to vector<16x32xf32>
    %13 = arith.select %11, %0, %12 : vector<16x32xi1>, vector<16x32xf32>
    %cst_4 = arith.constant dense<0.000000e+00> : vector<16xf32>
    %14 = vector.multi_reduction <add>, %13, %cst_4 [1] : vector<16x32xf32> to vector<16xf32>
    %15 = vector.shape_cast %14 : vector<16xf32> to vector<16x1xf32>
    %cst_5 = arith.constant dense<0xFF800000> : vector<16xf32>
    %16 = vector.multi_reduction <maximumf>, %0, %cst_5 [1] : vector<16x32xf32> to vector<16xf32>
    %17 = vector.shape_cast %16 : vector<16xf32> to vector<16x1xf32>
    %18 = vector.broadcast %17 : vector<16x1xf32> to vector<16x32xf32>
    %19 = arith.subf %0, %18 : vector<16x32xf32>
    %20 = math.exp %19 : vector<16x32xf32>
    %cst_6 = arith.constant dense<0.000000e+00> : vector<16xf32>
    %21 = vector.multi_reduction <add>, %20, %cst_6 [1] : vector<16x32xf32> to vector<16xf32>
    %22 = vector.shape_cast %21 : vector<16xf32> to vector<16x1xf32>
    %23 = arith.subf %15, %17 : vector<16x1xf32>
    %cst_7 = arith.constant 0.000000e+00 : f32
    %24 = vector.broadcast %cst_7 : f32 to vector<16x1xf32>
    %25 = arith.select %6, %24, %23 : vector<16x1xi1>, vector<16x1xf32>
    %26 = math.log %22 : vector<16x1xf32>
    %27 = arith.subf %26, %25 : vector<16x1xf32>
    %c0_8 = arith.constant 0 : index
    %c0_9 = arith.constant 0 : index
    %28 = vector.load %arg3[%c0_8, %c0_9] : memref<16x1xf32, #tpu.memory_space<vmem>>, vector<16x1xf32>
    tpu.vector_store %arg3[%c0_8, %c0_9], %27 {strides = array<i32>} : memref<16x1xf32, #tpu.memory_space<vmem>>, vector<16x1xf32>,
    return
  }
  func.func @transform_0(%arg0: i32) -> (i32, i32) {
    %c0_i32 = arith.constant 0 : i32
    %c0_i32_0 = arith.constant 0 : i32
    return %arg0, %c0_i32 : i32, i32
  }
  func.func @transform_1(%arg0: i32) -> (i32, i32) {
    %c0_i32 = arith.constant 0 : i32
    %c0_i32_0 = arith.constant 0 : i32
    return %arg0, %c0_i32 : i32, i32
  }
  func.func @transform_2(%arg0: i32) -> (i32, i32) {
    %c0_i32 = arith.constant 0 : i32
    %c0_i32_0 = arith.constant 0 : i32
    return %arg0, %c0_i32 : i32, i32
  }
}

</mosaic_0001>

<bundles_post_ra>
// kernel: tpu_custom_call.1
= control target key start
LH: loop header
LB: loop body
LE: loop exit
PB: predicated region body
PF: predicated region fallthrough
CT: control target
= control target key end

     0   :  { %vm35_vm0 = vcmask 261120   ;;  %v88_v1 = vmov 0   ;;  %v23_v11 = vlaneseq  ;;  %vm70_vm9 = vcmask 7168   ;;  %s144_s0 = inlined_call_operand.vmem [shape: f32[16,32], index: 0, kind: input, shape index: {}]   ;;  %s145_s1 = inlined_call_operand.vmem [shape: s32[16,1], index: 1, kind: input, shape index: {}]   ;;  %s146_s2 = inlined_call_operand.vmem [shape: f32[16,1], index: 2, kind: output, shape index: {}]  }
   0x1   :  { %v11_v0 = vld [vmem:[%s144_s0] sm:$0xff]  ;;  %78 = vset.pattern.permute.xlu1 %v88_v1  ;;  %79 = vset.pattern.permute.xlu0 %v88_v1  ;;  %v14_v4 = vld [vmem:[%s145_s1 + $0x8] sm:$0xff] }
   0x2   :  { %v13_v2 = vld [vmem:[%s145_s1] sm:$0xff]  ;;  %v42_v3 = vsel %vm35_vm0, %v11_v0, -inf  ;;  %vm16_vm4 = vcmp.lt.s32.totalorder %v14_v4, 0  ;;  %vm18_vm5 = vcmp.ge.s32.totalorder %v14_v4, 32  ;;  %v12_v7 = vld [vmem:[%s144_s0 + $0x8] sm:$0xff]  ;;  %v24_v12 = vand.u32 127, %v23_v11 }
   0x3   :  { %vm15_vm1 = vcmp.lt.s32.totalorder %v13_v2, 0  ;;  %vm17_vm2 = vcmp.ge.s32.totalorder %v13_v2, 32  ;;  %43 = vmax.xlane.f32.xlu0 %v42_v3  ;;  %vm123_vm6 = vmor %vm16_vm4, %vm18_vm5  ;;  %v45_v9 = vsel %vm35_vm0, %v12_v7, -inf }
   0x4   :  { %vm114_vm3 = vmor %vm15_vm1, %vm17_vm2  ;;  %v22_v10 = vsel %vm123_vm6, 0, %v14_v4 }
   0x5   :  { %v21_v6 = vsel %vm114_vm3, 0, %v13_v2 }
   0x6   :  { %26 = vperm.xlu1 %78, %v21_v6  }
   0xb   :  { %46 = vmax.xlane.f32.xlu0 %v45_v9 }
   0xe   :  { %29 = vperm.xlu1 %78, %v22_v10  }
  0x76   :  { %v44_v13 = vpop.xlane.xlu0 %43 }
  0x77   :  { %v48_v14 = vsub.f32 %v11_v0, %v44_v13 }
  0x78   :  { %v27_v15 = vpop.permute.xlu1 %26 }
  0x79   :  { %vm31_vm7 = vcmp.eq.s32.totalorder %v24_v12, %v27_v15  ;;  %v50_v16 = vmul.f32 1.442695, %v48_v14 }
  0x7a   :  { %v33_v17 = vsel %vm31_vm7, %v11_v0, 0.0 }
  0x7b   :  { %v36_v18 = vsel %vm35_vm0, %v33_v17, 0.0  ;;  %80 = vpow2.f32 %v50_v16 }
  0x7c   :  { %37 = vadd.xlane.f32.xlu0 %v36_v18 }
  0x7e   :  { %v47_v19 = vpop.xlane.xlu0 %46 }
  0x7f   :  { %v49_v20 = vsub.f32 %v12_v7, %v47_v19 }
  0x80   :  { %v30_v21 = vpop.permute.xlu1 %29 }
  0x81   :  { %vm32_vm8 = vcmp.eq.s32.totalorder %v24_v12, %v30_v21  ;;  %v81_v22 = vpop.eup %80  ;;  %v52_v23 = vmul.f32 1.442695, %v49_v20 }
  0x82   :  { %v34_v24 = vsel %vm32_vm8, %v12_v7, 0.0  ;;  %v54_v26 = vsel %vm35_vm0, %v81_v22, 0.0 }
  0x83   :  { %v39_v25 = vsel %vm35_vm0, %v34_v24, 0.0  ;;  %82 = vpow2.f32 %v52_v23  ;;  %55 = vadd.xlane.f32.xlu2 %v54_v26 }
  0x84   :  { %40 = vadd.xlane.f32.xlu1 %v39_v25 }
  0x89   :  { %v83_v27 = vpop.eup %82 }
  0x8a   :  { %v57_v28 = vsel %vm35_vm0, %v83_v27, 0.0 }
  0x8b   :  { %58 = vadd.xlane.f32.xlu2 %v57_v28 }
  0xef   :  { %v38_v30 = vpop.xlane.xlu0 %37 }
  0xf0   :  { %v60_v31 = vsub.f32 %v38_v30, %v44_v13 }
  0xf2   :  { %v62_v35 = vsel %vm114_vm3, 0.0, %v60_v31 }
  0xf6   :  { %v56_v29 = vpop.xlane.xlu2 %55 }
  0xf7   :  { %84 = vlog2.f32 %v56_v29  ;;  %v41_v36 = vpop.xlane.xlu1 %40 }
  0xf8   :  { %v61_v38 = vsub.f32 %v41_v36, %v47_v19 }
  0xfa   :  { %v63_v41 = vsel %vm123_vm6, 0.0, %v61_v38 }
  0xfd   :  { %v85_v32 = vpop.eup %84 }
  0xfe   :  { %v65_v33 = vmul.f32 0.6931472, %v85_v32  ;;  %v59_v34 = vpop.xlane.xlu2 %58 }
  0xff   :  { %86 = vlog2.f32 %v59_v34 }
 0x100   :  { %v68_v37 = vsub.f32 %v65_v33, %v62_v35 }
 0x102   :  { %71 = vst.msk [vmem:[%s146_s2] sm:$0xff] %vm70_vm9, %v68_v37 }
 0x105   :  { %v87_v39 = vpop.eup %86 }
 0x106   :  { %v67_v40 = vmul.f32 0.6931472, %v87_v39 }
 0x108   :  { %v69_v42 = vsub.f32 %v67_v40, %v63_v41 }
 0x10a   :  { %72 = vst.msk [vmem:[%s146_s2 + $0x8] sm:$0xff] %vm70_vm9, %v69_v42 }

</bundles_post_ra>
